<compile_context>
chip_gen: v7x
topology: tpu7x:2x2x1
jax: 0.10.0
libtpu: 0.0.40
codegen_flags: <defaults>
</compile_context>

<pallas_src>
import jax
import jax.numpy as jnp
from jax.experimental import pallas as pl
from jax.experimental.pallas import tpu as pltpu

LANE = 128
SUBLANES = 8            # rows of the f32 partial-sum block -> (8, 128) output per core
PAD_LOGIT = -1.0e4      # exp(-1e4) == 0 in f32  ->  padded elements contribute exactly 0
SMALL_N = 1 << 16       # below this, skip the kernel (launch/pad overhead dominates)


def _round_up(x, m):
    return (x + m - 1) // m * m


def _sublane_rows(dtype):
    """Minimum sublane multiple for this dtype's packed layout (f32->8, bf16->16, 8-bit->32)."""
    bits = jnp.dtype(dtype).itemsize * 8
    return max(SUBLANES, 256 // bits)


def _num_tensorcores():
    """Best-effort TensorCores-per-chip; safe fallback of 1 (correct everywhere)."""
    # TODO(synk): on v7x, verify the leading 'parallel' axis really shards across the
    # two TensorCores (xprof / per-core bundle counts); if it does not, switch that
    # axis to pltpu.CORE_PARALLEL or restructure with pl.core_map(create_tensorcore_mesh).
    try:
        info = pltpu.get_tpu_info()
        for name in ("num_tensorcores", "tensorcore_count", "num_cores",
                     "cores_per_chip", "core_count"):
            v = getattr(info, name, None)
            if isinstance(v, int) and 1 <= v <= 8:
                return min(v, 2)
    except Exception:
        pass
    return 1


def _make_bce_kernel(rows_valid, tile_rows, tiles_per_core, apply_mask):
    """Builds the per-tile BCE partial-sum kernel (static geometry baked in)."""

    def kernel(seg_ref, lab_ref, out_ref):
        c = pl.program_id(0)
        i = pl.program_id(1)

        @pl.when(i == 0)
        def _():
            out_ref[...] = jnp.zeros_like(out_ref)

        x = seg_ref[...].astype(jnp.float32)   # logits (cast in-kernel; inputs stay narrow)
        y = lab_ref[...].astype(jnp.float32)   # targets

        # Numerically stable BCE with logits: max(x,0) - x*y + log1p(exp(-|x|))
        # (2 transcendentals / element -- the EUP floor; everything else is VALU.)
        loss = jnp.maximum(x, 0.0) - x * y + jnp.log1p(jnp.exp(-jnp.abs(x)))

        if apply_mask:
            # Mask rows beyond the real (padded-to-128) extent: covers the ragged
            # boundary block and any surplus (clamped) grid steps.
            row0 = (c * tiles_per_core + i) * tile_rows
            rid = jax.lax.broadcasted_iota(jnp.int32, loss.shape, 0) + row0
            loss = jnp.where(rid < rows_valid, loss, 0.0)

        # Fold (tile_rows, 128) -> (8, 128): layout-preserving reshape + VALU adds.
        out_ref[...] += jnp.sum(loss.reshape(-1, SUBLANES, LANE), axis=0)

    return kernel


def _reference(labels, seg):
    x = seg.astype(jnp.float32)
    y = labels.astype(jnp.float32)
    loss = jnp.maximum(x, 0.0) - x * y + jnp.log1p(jnp.exp(-jnp.abs(x)))
    return jnp.mean(loss)


def loss_function(labels, seg, bce_weight=0.5, *, tile_rows=4096, force_kernel=False):
    """JAX/Pallas equivalent of LossFunction.forward(labels, seg)."""
    assert labels.shape == seg.shape
    del bce_weight  # unused by the reference forward()
    n = int(seg.size)
    if n == 0:
        return jnp.float32(0.0)

    # ---- small-input fast path --------------------------------------------
    if n < SMALL_N and not force_kernel:
        return _reference(labels, seg)

    # ---- geometry -----------------------------------------------------------
    granule = max(_sublane_rows(seg.dtype), _sublane_rows(labels.dtype))
    chunk = granule * LANE                       # minimal pad granule (<= 4096 elems)
    n_pad = _round_up(n, chunk)
    rows_up = n_pad // LANE                      # multiple of `granule`

    tile_rows = int(tile_rows)
    tile_rows = max(granule, (tile_rows // granule) * granule)
    tile_rows = min(tile_rows, rows_up)

    ncores = _num_tensorcores()
    tiles_total = pl.cdiv(rows_up, tile_rows)
    tiles_per_core = pl.cdiv(tiles_total, ncores)
    apply_mask = (ncores * tiles_per_core * tile_rows) != rows_up
    last_tile = tiles_total - 1

    # ---- lane-dense slabs in NATIVE dtype (pad only to a 128-lane granule) --
    # Pad values give exactly-zero loss: exp(-1e4) underflows to 0 in f32.
    # NOTE: fp8 logits would saturate PAD_LOGIT in the native dtype -- still a
    # huge negative, but keep wider float logits for the padded path.
    def to_slab(a, pad_value):
        flat = a.reshape(-1)
        if n_pad != n:
            flat = jnp.pad(flat, (0, n_pad - n), constant_values=pad_value)
        return flat.reshape(rows_up, LANE)

    seg2 = to_slab(seg, PAD_LOGIT)
    lab2 = to_slab(labels, 0)

    # ---- specs --------------------------------------------------------------
    def in_index(c, i):
        t = c * tiles_per_core + i
        # Clamp so a surplus grid step never issues a fully out-of-bounds DMA;
        # its contribution is zeroed by the in-kernel row mask (logical offset).
        return (jnp.minimum(t, last_tile), 0)

    in_spec = pl.BlockSpec((tile_rows, LANE), in_index)
    out_spec = pl.BlockSpec((SUBLANES, LANE), lambda c, i: (c, 0))

    partials = pl.pallas_call(
        _make_bce_kernel(rows_up, tile_rows, tiles_per_core, apply_mask),
        out_shape=jax.ShapeDtypeStruct((ncores * SUBLANES, LANE), jnp.float32),
        grid_spec=pltpu.PrefetchScalarGridSpec(
            num_scalar_prefetch=0,
            grid=(ncores, tiles_per_core),
            in_specs=[in_spec, in_spec],
            out_specs=out_spec,
        ),
        compiler_params=pltpu.CompilerParams(
            dimension_semantics=("parallel", "arbitrary"),
            vmem_limit_bytes=48 << 20,   # headroom for 4096-row tiles; < v7x 64 MiB physical
        ),
    )(seg2, lab2)

    # Final tiny cross-lane reduce in the wrapper; mean over the REAL element count
    # (matches nn.BCEWithLogitsLoss default 'mean').
    return jnp.sum(partials) / jnp.float32(n)


if __name__ == "__main__":
    key = jax.random.PRNGKey(0)
    k1, k2, k3, k4 = jax.random.split(key, 4)

    # U-Net-style segmentation logits / labels: NCHW [2, 4, 16, 16].
    seg = jax.random.normal(k1, (2, 4, 16, 16), dtype=jnp.float32)
    labels = (jax.random.uniform(k2, (2, 4, 16, 16)) > 0.5).astype(jnp.float32)

    out_fast = jax.block_until_ready(loss_function(labels, seg))                    # fast path
    out_kern = jax.block_until_ready(loss_function(labels, seg, force_kernel=True))  # kernel path
    ref = jax.block_until_ready(_reference(labels, seg))
    assert jnp.allclose(out_fast, ref, rtol=1e-5, atol=1e-5), (out_fast, ref)
    assert jnp.allclose(out_kern, ref, rtol=1e-5, atol=1e-5), (out_kern, ref)

    # Ragged size + bf16 logits: exercises the minimal 128-lane pad, dtype-aware
    # tile clamp, multi-tile grid, and the in-kernel boundary-row mask.
    seg2 = jax.random.normal(k3, (2, 4, 30, 30), dtype=jnp.bfloat16)
    lab2 = (jax.random.uniform(k4, (2, 4, 30, 30)) > 0.5).astype(jnp.float32)
    out2 = jax.block_until_ready(loss_function(lab2, seg2, force_kernel=True, tile_rows=48))
    ref2 = jax.block_until_ready(_reference(lab2, seg2))
    assert jnp.allclose(out2, ref2, rtol=1e-4, atol=1e-5), (out2, ref2)

    print("KERNEL_OK")
</pallas_src>

<mosaic_0001>
module attributes {stable_mosaic.version = 11 : i64} {
  func.func @kernel(%arg0: i32, %arg1: i32, %arg2: memref<16x128xf32, #tpu.memory_space<vmem>>, %arg3: memref<16x128xf32, #tpu.memory_space<vmem>>, %arg4: memref<8x128xf32, #tpu.memory_space<vmem>>) attributes {dimension_semantics = [#tpu.dimension_semantics<parallel>, #tpu.dimension_semantics<arbitrary>], iteration_bounds = array<i64: 1, 1>, scalar_prefetch = 0 : i64, scratch_operands = 0 : i64, tpu.core_type = #tpu.core_type<tc>, window_params = [{transform_indices = @transform_0, window_bounds = array<i64: 16, 128>}, {transform_indices = @transform_1, window_bounds = array<i64: 16, 128>}, {transform_indices = @transform_2, window_bounds = array<i64: 8, 128>}]} {
    %c0_i32 = arith.constant 0 : i32
    %0 = arith.cmpi eq, %arg1, %c0_i32 : i32
    %1 = arith.extui %0 : i1 to i32
    %c0_i32_0 = arith.constant 0 : i32
    %2 = arith.cmpi ne, %1, %c0_i32_0 : i32
    scf.if %2 {
      %cst_10 = arith.constant 0.000000e+00 : f32
      %20 = vector.broadcast %cst_10 : f32 to vector<8x128xf32>
      %c0_11 = arith.constant 0 : index
      %c0_12 = arith.constant 0 : index
      %21 = vector.load %arg4[%c0_11, %c0_12] : memref<8x128xf32, #tpu.memory_space<vmem>>, vector<8x128xf32>
      tpu.vector_store %arg4[%c0_11, %c0_12], %20 {strides = array<i32>} : memref<8x128xf32, #tpu.memory_space<vmem>>, vector<8x128xf32>,
    } else {
    }
    %c0 = arith.constant 0 : index
    %c0_1 = arith.constant 0 : index
    %3 = vector.load %arg2[%c0, %c0_1] : memref<16x128xf32, #tpu.memory_space<vmem>>, vector<16x128xf32>
    %c0_2 = arith.constant 0 : index
    %c0_3 = arith.constant 0 : index
    %4 = vector.load %arg3[%c0_2, %c0_3] : memref<16x128xf32, #tpu.memory_space<vmem>>, vector<16x128xf32>
    %cst = arith.constant 0.000000e+00 : f32
    %5 = vector.broadcast %cst : f32 to vector<16x128xf32>
    %6 = arith.maximumf %3, %5 : vector<16x128xf32>
    %7 = arith.mulf %3, %4 : vector<16x128xf32>
    %8 = arith.subf %6, %7 : vector<16x128xf32>
    %9 = math.absf %3 : vector<16x128xf32>
    %cst_4 = arith.constant 0.000000e+00 : f32
    %10 = vector.broadcast %cst_4 : f32 to vector<16x128xf32>
    %11 = arith.subf %10, %9 : vector<16x128xf32>
    %12 = math.exp %11 : vector<16x128xf32>
    %13 = math.log1p %12 : vector<16x128xf32>
    %14 = arith.addf %8, %13 : vector<16x128xf32>
    %c0_5 = arith.constant 0 : index
    %c0_6 = arith.constant 0 : index
    %15 = vector.load %arg4[%c0_5, %c0_6] : memref<8x128xf32, #tpu.memory_space<vmem>>, vector<8x128xf32>
    %16 = vector.shape_cast %14 : vector<16x128xf32> to vector<2x8x128xf32>
    %cst_7 = arith.constant dense<0.000000e+00> : vector<8x128xf32>
    %17 = vector.multi_reduction <add>, %16, %cst_7 [0] : vector<2x8x128xf32> to vector<8x128xf32>
    %18 = arith.addf %15, %17 : vector<8x128xf32>
    %c0_8 = arith.constant 0 : index
    %c0_9 = arith.constant 0 : index
    %19 = vector.load %arg4[%c0_8, %c0_9] : memref<8x128xf32, #tpu.memory_space<vmem>>, vector<8x128xf32>
    tpu.vector_store %arg4[%c0_8, %c0_9], %18 {strides = array<i32>} : memref<8x128xf32, #tpu.memory_space<vmem>>, vector<8x128xf32>,
    return
  }
  func.func @transform_0(%arg0: i32, %arg1: i32) -> (i32, i32) {
    %c1_i32 = arith.constant 1 : i32
    %0 = arith.muli %arg0, %c1_i32 : i32
    %1 = arith.addi %0, %arg1 : i32
    %c0_i32 = arith.constant 0 : i32
    %2 = arith.minsi %1, %c0_i32 : i32
    %c0_i32_0 = arith.constant 0 : i32
    %c0_i32_1 = arith.constant 0 : i32
    return %2, %c0_i32_0 : i32, i32
  }
  func.func @transform_1(%arg0: i32, %arg1: i32) -> (i32, i32) {
    %c1_i32 = arith.constant 1 : i32
    %0 = arith.muli %arg0, %c1_i32 : i32
    %1 = arith.addi %0, %arg1 : i32
    %c0_i32 = arith.constant 0 : i32
    %2 = arith.minsi %1, %c0_i32 : i32
    %c0_i32_0 = arith.constant 0 : i32
    %c0_i32_1 = arith.constant 0 : i32
    return %2, %c0_i32_0 : i32, i32
  }
  func.func @transform_2(%arg0: i32, %arg1: i32) -> (i32, i32) {
    %c0_i32 = arith.constant 0 : i32
    %c0_i32_0 = arith.constant 0 : i32
    return %arg0, %c0_i32 : i32, i32
  }
}

</mosaic_0001>

<bundles_post_ra>
// kernel: tpu_custom_call.1
= control target key start
LH: loop header
LB: loop body
LE: loop exit
PB: predicated region body
PF: predicated region fallthrough
CT: control target
= control target key end

     0   :  { %7 = vsyncpa [#allocation3], 0  ;;  %s269_s0 = inlined_call_operand.hbm [shape: f32[16,128], index: 0, kind: input, shape index: {}]   ;;  %s270_s1 = inlined_call_operand.hbm [shape: f32[16,128], index: 1, kind: input, shape index: {}]   ;;  %s271_s2 = inlined_call_operand.hbm [shape: f32[8,128], index: 2, kind: output, shape index: {}]  }
   0x1   :  { %8 = vsyncpa [#allocation6], 0 }
   0x2   :  { %9 = vsyncpa [#allocation4], 0  ;;  %s213_s9 = smov [#allocation2]   ;;  %s141_s13 = scalar_lea.hbm %s269_s0, 256 }
   0x3   :  { %s21_s10 = sshll.u32 %s213_s9, 4  ;;  %p142_p0 = scmp.ne.s32.totalorder %s269_s0, %s141_s13  ;;  %s22_s10 = int_to_ptr.vmem [resolvable:$true] %s21_s10 }
   0x4   :  { %p145_p1 = scmp.lt.u32.totalorder %s141_s13, %s269_s0 }
   0x6   :  { %p147_p2 = pnand %p145_p1, %p142_p0 }
   0x8   :  { %150 = shalt.err (!%p147_p2)
}
   0x9   :  { %s151_s18 = scalar_lea.vmem %s22_s10, 256  ;;  %p156_p4 = scmp.lt.s32.totalorder %s22_s10, %s22_s10 }
   0xa   :  { %p152_p3 = scmp.ne.s32.totalorder %s22_s10, %s151_s18  ;;  %p157_p5 = scmp.lt.s32.totalorder %s151_s18, %s151_s18 }
   0xc   :  { %p158_p6 = por %p157_p5, %p156_p4 }
   0xe   :  { %p159_p7 = pnand %p158_p6, %p152_p3 }
  0x10   :  { %162 = shalt.err (!%p159_p7)
}
  0x11   :  { %s214_s19 = smov 128   ;;  %s215_s20 = smov 8  }
  0x12   :  { %27 = dma.hbm_to_vmem [thread:$0]  %s269_s0, 256, %s22_s10, [#allocation3], %s214_s19, %s214_s19, %s215_s20  }
  0x13   :  { %s216_s23 = smov [#allocation5]   ;;  %s163_s27 = scalar_lea.hbm %s270_s1, 256 }
  0x14   :  { %s39_s24 = sshll.u32 %s216_s23, 4  ;;  %p164_p8 = scmp.ne.s32.totalorder %s270_s1, %s163_s27  ;;  %s40_s24 = int_to_ptr.vmem [resolvable:$true] %s39_s24 }
  0x15   :  { %p167_p9 = scmp.lt.u32.totalorder %s163_s27, %s270_s1 }
  0x17   :  { %p169_p10 = pnand %p167_p9, %p164_p8 }
  0x19   :  { %172 = shalt.err (!%p169_p10)
}
  0x1a   :  { %s173_s4 = scalar_lea.vmem %s40_s24, 256  ;;  %p178_p12 = scmp.lt.s32.totalorder %s40_s24, %s40_s24 }
  0x1b   :  { %p174_p11 = scmp.ne.s32.totalorder %s40_s24, %s173_s4  ;;  %p179_p13 = scmp.lt.s32.totalorder %s173_s4, %s173_s4 }
  0x1d   :  { %p180_p0 = por %p179_p13, %p178_p12 }
  0x1f   :  { %p181_p1 = pnand %p180_p0, %p174_p11 }
  0x21   :  { %184 = shalt.err (!%p181_p1)
}
  0x22   :  { %45 = dma.hbm_to_vmem [thread:$0]  %s270_s1, 256, %s40_s24, [#allocation6], %s214_s19, %s214_s19, %s215_s20  }
  0x23   :  { %207 = dma.done.wait [#allocation3], 256  }
  0x24   :  { %208 = vsyncadd [#allocation3], 4294967040 }
  0x25   :  { %209 = dma.done.wait [#allocation6], 256  }
  0x26   :  { %210 = vsyncadd [#allocation6], 4294967040  ;;  %v65_v0 = vld [vmem:[#allocation2] sm:$0xff]  ;;  %v66_v1 = vld [vmem:[#allocation2 + $0x8] sm:$0xff]  ;;  %s217_s1 = smov [#allocation7]  }
  0x27   :  { %v75_v2 = vand.u32 2147483647, %v65_v0  ;;  %v76_v3 = vand.u32 2147483647, %v66_v1  ;;  %v67_v14 = vld [vmem:[#allocation5] sm:$0xff]  ;;  %v68_v15 = vld [vmem:[#allocation5 + $0x8] sm:$0xff] }
  0x28   :  { %v69_v17 = vmax.f32 %v65_v0, 0.0  ;;  %v71_v18 = vmul.f32 %v67_v14, %v65_v0  ;;  %v70_v21 = vmax.f32 %v66_v1, 0.0  ;;  %v72_v22 = vmul.f32 %v68_v15, %v66_v1  ;;  %s113_s6 = sshll.u32 %s217_s1, 4  ;;  %s114_s6 = int_to_ptr.vmem [resolvable:$true] %s113_s6 }
  0x29   :  { %v77_v4 = vsub.f32 0.0, %v75_v2  ;;  %v78_v5 = vsub.f32 0.0, %v76_v3  ;;  %s185_s7 = scalar_lea.vmem %s114_s6, 128  ;;  %p190_p3 = scmp.lt.s32.totalorder %s114_s6, %s114_s6 }
  0x2a   :  { %v73_v26 = vsub.f32 %v69_v17, %v71_v18  ;;  %v74_v29 = vsub.f32 %v70_v21, %v72_v22  ;;  %p186_p2 = scmp.ne.s32.totalorder %s114_s6, %s185_s7  ;;  %p191_p4 = scmp.lt.s32.totalorder %s185_s7, %s185_s7 }
  0x2b   :  { %v79_v6 = vmul.f32 1.442695, %v77_v4  ;;  %v81_v7 = vmul.f32 1.442695, %v78_v5 }
  0x2c   :  { %p192_p5 = por %p191_p4, %p190_p3 }
  0x2d   :  { %133 = vpow2.f32 %v79_v6 }
  0x2e   :  { %135 = vpow2.f32 %v81_v7  ;;  %p193_p6 = pnand %p192_p5, %p186_p2 }
  0x37   :  { %v134_v8 = vpop.eup %133 }
  0x38   :  { %v136_v9 = vpop.eup %135  ;;  %v83_v10 = vadd.f32 1.0, %v134_v8  ;;  %v86_v12 = vmul.f32 -0.5, %v134_v8  ;;  %v89_v19 = vand.u32 2147483647, %v134_v8 }
  0x39   :  { %v92_v11 = vadd.f32 1.0, %v136_v9  ;;  %v95_v13 = vmul.f32 -0.5, %v136_v9  ;;  %v98_v23 = vand.u32 2147483647, %v136_v9 }
  0x3a   :  { %137 = vlog2.f32 %v83_v10  ;;  %v87_v16 = vadd.f32 1.0, %v86_v12  ;;  %vm90_vm0 = vcmp.lt.f32.partialorder %v89_v19, 0.0004427343 }
  0x3b   :  { %139 = vlog2.f32 %v92_v11  ;;  %v96_v20 = vadd.f32 1.0, %v95_v13  ;;  %vm99_vm1 = vcmp.lt.f32.partialorder %v98_v23, 0.0004427343 }
  0x3c   :  { %v88_v24 = vmul.f32 %v134_v8, %v87_v16 }
  0x3d   :  { %v97_v27 = vmul.f32 %v136_v9, %v96_v20 }
  0x44   :  { %v138_v25 = vpop.eup %137 }
  0x45   :  { %v140_v28 = vpop.eup %139  ;;  %v85_v30 = vmul.f32 0.6931472, %v138_v25 }
  0x46   :  { %v94_v31 = vmul.f32 0.6931472, %v140_v28 }
  0x47   :  { %v91_v32 = vsel %vm90_vm0, %v88_v24, %v85_v30 }
  0x48   :  { %v100_v33 = vsel %vm99_vm1, %v97_v27, %v94_v31  ;;  %v101_v34 = vadd.f32 %v91_v32, %v73_v26 }
  0x49   :  { %v102_v35 = vadd.f32 %v100_v33, %v74_v29 }
  0x4b   :  { %v104_v36 = vadd.f32 %v102_v35, %v101_v34 }
  0x4d   :  { %106 = vst [vmem:[#allocation7] sm:$0xff] %v104_v36 }
  0x4e   :  { %196 = shalt.err (!%p193_p6)
}
  0x4f   :  { %s197_s10 = scalar_lea.hbm %s271_s2, 128 }
  0x50   :  { %p198_p7 = scmp.ne.s32.totalorder %s271_s2, %s197_s10  ;;  %p201_p8 = scmp.lt.u32.totalorder %s197_s10, %s271_s2 }
  0x52   :  { %p203_p9 = pnand %p201_p8, %p198_p7 }
  0x54   :  { %206 = shalt.err (!%p203_p9)
}
  0x55   :  { %116 = dma.vmem_to_hbm [thread:$0]  %s114_s6, 128, %s271_s2, [#allocation4]  }
  0x56   :  { %211 = dma.done.wait [#allocation4], 128  }
  0x57   :  { %212 = vsyncadd [#allocation4], 4294967168 }
  0x58   :  { %120 = vsyncpa [#allocation3], 1 }
  0x59   :  { %121 = vsyncpa [#allocation6], 1 }
  0x5a   :  { %122 = vsyncpa [#allocation4], 1 }

</bundles_post_ra>
